<compile_context>
chip_gen: v7x
topology: tpu7x:2x2x1
jax: 0.10.0
libtpu: 0.0.40
codegen_flags: <defaults>
</compile_context>

<pallas_src>
import jax
import jax.numpy as jnp
from jax.experimental import pallas as pl
from jax.experimental.pallas import tpu as pltpu


def _bbox_head_kernel(x_ref, w_ref, b_ref, o_ref):
    # x_ref: (C, t_hw)  w_ref: (out_ch, C)  b_ref: (out_ch, 1) f32
    # o_ref: (out_ch, t_hw)
    acc = jnp.dot(w_ref[...], x_ref[...], preferred_element_type=jnp.float32)
    o_ref[...] = (acc + b_ref[...]).astype(o_ref.dtype)


def _pick_hw_tile(hw, c, out_ch, itemsize, budget_bytes=12 * 1024 * 1024):
    """Spatial (lane) tile: full extent for small maps, else a multiple of 128
    capped by a double-buffered VMEM budget that fits every TPU generation."""
    if hw <= 512:
        return hw  # block == full array dim satisfies the (8,128) rule
    # Double-buffered input block + double-buffered output block, per column.
    per_col = 2 * (c + out_ch) * itemsize
    t = min(2048, hw, max(128, budget_bytes // per_col))
    return max(128, (t // 128) * 128)


def bbox_head_forward(x_nchw, weight, bias, num_anchors):
    """x_nchw: (N, C, H, W); weight: (A*4, C, 1, 1); bias: (A*4,)."""
    N, C, H, W = x_nchw.shape
    out_ch = num_anchors * 4
    HW = H * W

    # Free views only -- no transpose of the big activation tensor.
    x3d = x_nchw.reshape(N, C, HW)
    w2d = weight.reshape(out_ch, C).astype(x3d.dtype)
    b2d = bias.astype(jnp.float32).reshape(out_ch, 1)

    t_hw = _pick_hw_tile(HW, C, out_ch, jnp.dtype(x3d.dtype).itemsize)
    grid = (N, pl.cdiv(HW, t_hw))

    out3d = pl.pallas_call(
        _bbox_head_kernel,
        out_shape=jax.ShapeDtypeStruct((N, out_ch, HW), x3d.dtype),
        grid_spec=pltpu.PrefetchScalarGridSpec(
            num_scalar_prefetch=0,
            grid=grid,
            in_specs=[
                # x block: (C, t_hw); batch dim squeezed out.
                pl.BlockSpec((None, C, t_hw), lambda n, j: (n, 0, j)),
                # weight / bias stay resident across the grid.
                pl.BlockSpec((out_ch, C), lambda n, j: (0, 0)),
                pl.BlockSpec((out_ch, 1), lambda n, j: (0, 0)),
            ],
            out_specs=pl.BlockSpec((None, out_ch, t_hw), lambda n, j: (n, 0, j)),
        ),
        compiler_params=pltpu.CompilerParams(
            dimension_semantics=("parallel", "parallel"),
            vmem_limit_bytes=32 * 1024 * 1024,
        ),
    )(x3d, w2d, b2d)

    # Tiny permute on the 12-channel output only:
    # (N, out_ch, HW) -> (N, HW, out_ch) -> (N, HW*A, 4)
    out = jnp.transpose(out3d, (0, 2, 1))
    return out.reshape(N, HW * num_anchors, 4)


def _reference(x, weight, bias, num_anchors):
    N, C, H, W = x.shape
    out_ch = num_anchors * 4
    ref = jnp.einsum("nchw,oc->nhwo", x, weight.reshape(out_ch, C)) + bias
    return ref.reshape(N, H * W * num_anchors, 4)


if __name__ == "__main__":
    key = jax.random.PRNGKey(0)
    k1, k2, k3, k4, k5, k6 = jax.random.split(key, 6)

    # Case 1: small shapes consistent with the module (single spatial block).
    N, C, H, W, A = 2, 32, 8, 8, 3
    x = jax.random.normal(k1, (N, C, H, W), dtype=jnp.float32)
    w = jax.random.normal(k2, (A * 4, C, 1, 1), dtype=jnp.float32) * 0.05
    b = jax.random.normal(k3, (A * 4,), dtype=jnp.float32) * 0.05
    out = jax.block_until_ready(bbox_head_forward(x, w, b, A))
    ref = _reference(x, w, b, A)
    assert out.shape == (N, H * W * A, 4)
    assert jnp.allclose(out, ref, atol=1e-4, rtol=1e-4)

    # Case 2: FPN-like map (40x40) that exercises the multi-tile path with a
    # non-divisible (masked) spatial tail -- no divisibility asserts needed.
    N, C, H, W, A = 1, 64, 40, 40, 2
    x = jax.random.normal(k4, (N, C, H, W), dtype=jnp.float32)
    w = jax.random.normal(k5, (A * 4, C, 1, 1), dtype=jnp.float32) * 0.05
    b = jax.random.normal(k6, (A * 4,), dtype=jnp.float32) * 0.05
    out = jax.block_until_ready(bbox_head_forward(x, w, b, A))
    ref = _reference(x, w, b, A)
    assert out.shape == (N, H * W * A, 4)
    assert jnp.allclose(out, ref, atol=1e-4, rtol=1e-4)

    print("KERNEL_OK")
</pallas_src>

<mosaic_0001>
module attributes {stable_mosaic.version = 11 : i64} {
  func.func @_bbox_head_kernel(%arg0: i32, %arg1: i32, %arg2: memref<1x32x64xf32, #tpu.memory_space<vmem>>, %arg3: memref<12x32xf32, #tpu.memory_space<vmem>>, %arg4: memref<12x1xf32, #tpu.memory_space<vmem>>, %arg5: memref<1x12x64xf32, #tpu.memory_space<vmem>>) attributes {dimension_semantics = [#tpu.dimension_semantics<parallel>, #tpu.dimension_semantics<parallel>], iteration_bounds = array<i64: 2, 1>, scalar_prefetch = 0 : i64, scratch_operands = 0 : i64, tpu.core_type = #tpu.core_type<tc>, window_params = [{transform_indices = @transform_0, window_bounds = array<i64: 1, 32, 64>}, {pipeline_mode = #tpu.pipeline_mode<synchronous>, transform_indices = @transform_1, window_bounds = array<i64: 12, 32>}, {pipeline_mode = #tpu.pipeline_mode<synchronous>, transform_indices = @transform_2, window_bounds = array<i64: 12, 1>}, {transform_indices = @transform_3, window_bounds = array<i64: 1, 12, 64>}]} {
    %c0 = arith.constant 0 : index
    %c0_0 = arith.constant 0 : index
    %0 = vector.load %arg3[%c0, %c0_0] : memref<12x32xf32, #tpu.memory_space<vmem>>, vector<12x32xf32>
    %c0_1 = arith.constant 0 : index
    %c0_2 = arith.constant 0 : index
    %c0_3 = arith.constant 0 : index
    %1 = vector.load %arg2[%c0_1, %c0_2, %c0_3] : memref<1x32x64xf32, #tpu.memory_space<vmem>>, vector<1x32x64xf32>
    %2 = vector.shape_cast %1 : vector<1x32x64xf32> to vector<32x64xf32>
    %cst = arith.constant dense<0.000000e+00> : vector<12x64xf32>
    %3 = tpu.matmul %0, %2, %cst {dimension_numbers = #tpu.dot_dimension_numbers<[1], [0], [0], [1], [0, 0, 1, 1], [], []>} : vector<12x32xf32>, vector<32x64xf32>, vector<12x64xf32> -> vector<12x64xf32>
    %c0_4 = arith.constant 0 : index
    %c0_5 = arith.constant 0 : index
    %4 = vector.load %arg4[%c0_4, %c0_5] : memref<12x1xf32, #tpu.memory_space<vmem>>, vector<12x1xf32>
    %5 = vector.broadcast %4 : vector<12x1xf32> to vector<12x64xf32>
    %6 = arith.addf %3, %5 : vector<12x64xf32>
    %c0_6 = arith.constant 0 : index
    %c0_7 = arith.constant 0 : index
    %c0_8 = arith.constant 0 : index
    %7 = vector.load %arg5[%c0_6, %c0_7, %c0_8] : memref<1x12x64xf32, #tpu.memory_space<vmem>>, vector<1x12x64xf32>
    %8 = vector.shape_cast %7 : vector<1x12x64xf32> to vector<12x64xf32>
    %9 = vector.shape_cast %6 : vector<12x64xf32> to vector<1x12x64xf32>
    tpu.vector_store %arg5[%c0_6, %c0_7, %c0_8], %9 {strides = array<i32>} : memref<1x12x64xf32, #tpu.memory_space<vmem>>, vector<1x12x64xf32>,
    return
  }
  func.func @transform_0(%arg0: i32, %arg1: i32) -> (i32, i32, i32) {
    %c0_i32 = arith.constant 0 : i32
    %c0_i32_0 = arith.constant 0 : i32
    return %arg0, %c0_i32, %arg1 : i32, i32, i32
  }
  func.func @transform_1(%arg0: i32, %arg1: i32) -> (i32, i32) {
    %c0_i32 = arith.constant 0 : i32
    %c0_i32_0 = arith.constant 0 : i32
    %c0_i32_1 = arith.constant 0 : i32
    return %c0_i32, %c0_i32_0 : i32, i32
  }
  func.func @transform_2(%arg0: i32, %arg1: i32) -> (i32, i32) {
    %c0_i32 = arith.constant 0 : i32
    %c0_i32_0 = arith.constant 0 : i32
    %c0_i32_1 = arith.constant 0 : i32
    return %c0_i32, %c0_i32_0 : i32, i32
  }
  func.func @transform_3(%arg0: i32, %arg1: i32) -> (i32, i32, i32) {
    %c0_i32 = arith.constant 0 : i32
    %c0_i32_0 = arith.constant 0 : i32
    return %arg0, %c0_i32, %arg1 : i32, i32, i32
  }
}

</mosaic_0001>

<bundles_post_ra>
// kernel: tpu_custom_call.1
= control target key start
LH: loop header
LB: loop body
LE: loop exit
PB: predicated region body
PF: predicated region fallthrough
CT: control target
= control target key end

     0   :  { %8 = vsyncpa [#allocation3], 0  ;;  %s754_s0 = inlined_call_operand.hbm [shape: f32[2,32,64], index: 0, kind: input, shape index: {}]   ;;  %s755_s1 = inlined_call_operand.vmem [shape: f32[12,32], index: 1, kind: input, shape index: {}]   ;;  %s756_s2 = inlined_call_operand.vmem [shape: f32[12,1], index: 2, kind: input, shape index: {}]   ;;  %s757_s3 = inlined_call_operand.vmem [shape: f32[2,12,64], index: 3, kind: output, shape index: {}]  }
   0x1   :  { %10 = vsyncpa [#allocation3 + $0x1], 0  ;;  %s616_s12 = smov 0   ;;  %s618_s13 = smov 0  }
   0x2   :  { %s620_s14 = smov 0   ;;  %s622_s15 = smov 0  }
   0x3   :  { %s624_s16 = smov 0   ;;  %s626_s17 = smov 0  }
   0x4 LB: > { %s409_s18 = sadd.s32 4294967295, %s590_s17   ;;  %s28_s19 = sadd.s32 1, %s586_s16  ;;  %s590_s17 = sphi %s626_s17, %s16_s17   ;;  %s586_s16 = sphi %s624_s16, %s765_s16   ;;  %s582_s15 = sphi %s622_s15, %s764_s15   ;;  %s578_s14 = sphi %s620_s14, %s763_s14   ;;  %s574_s13 = sphi %s618_s13, %s762_s13   ;;  %s570_s12 = sphi %s616_s12, %s761_s12  }
   0x5   : > { %p30_p0 = scmp.ge.s32.totalorder %s28_s19, 2  ;;  %s37_s20 = sadd.s32 1, %s578_s14 }
   0x6   : > { %p44_p1 = scmp.ne.s32.totalorder %s578_s14, %s574_s13  ;;  %p45_p2 = scmp.eq.s32.totalorder %s590_s17, 0 }
   0x7   : > { %s767_s19 = smov (%p30_p0, %s28_s19), 0  ;;  %p50_p4 = scmp.ne.s32.totalorder %s574_s13, %s570_s12 }
   0x8   : > { %p652_p3 = por %p45_p2, %p44_p1  ;;  %s32_s22 = ssub.s32 %s586_s16, %s767_s19 }
   0x9   : > { %p51_p5 = scmp.eq.s32.totalorder %s409_s18, 0  ;;  %p35_p6 = scmp.eq.s32.totalorder %s32_s22, 0 }
   0xa   : > { %p457_p8 = scmp.lt.s32.totalorder %s590_s17, 2  ;;  %s150_s25 = sand.u32 1, %s578_s14  }
   0xb   : > { %p659_p7 = por %p51_p5, %p50_p4  ;;  %s424_s26 = sshll.u32 %s586_s16, 9 }
   0xc   : > { %s665_s24 = scalar_select %p35_p6, %s578_s14, %s37_s20  }
   0xd   : > { %s413_s27 = sshll.u32 %s150_s25, 5  ;;  %s672_s30 = scalar_lea.hbm %s754_s0, %s424_s26 }
   0xe   : > { %s154_s4 = scalar_lea.vmem [#allocation2], %s413_s27  ;;  %p676_p9 = pnand %p457_p8, %p652_p3 }
   0xf   : > { %s162_s5 = sshll.u32 %s154_s4, 4  ;;  %s682_s7 = scalar_lea.sflag [#allocation3], %s150_s25  ;;  %s680_s5 = int_to_ptr.vmem [resolvable:$true] %s162_s5 }
  0x10   : > { %s510_s8 = scalar_lea.hbm %s672_s30, 512  ;;  %p512_p11 = pneg %p676_p9 }
  0x11   : > { %p511_p10 = scmp.ne.s32.totalorder %s672_s30, %s510_s8  ;;  %s515_s11 = scalar_lea.hbm %s754_s0, 1024 }
  0x12   : > { %p516_p0 = scmp.lt.u32.totalorder %s672_s30, %s754_s0  ;;  %p517_p1 = scmp.lt.u32.totalorder %s515_s11, %s510_s8 }
  0x13   : > { %p513_p12 = pnand %p512_p11, %p511_p10  ;;  %p519_p3 = scmp.lt.u32.totalorder %s510_s8, %s672_s30 }
  0x14   : > { %p518_p2 = por %p517_p1, %p516_p0 }
  0x15   : > { %p514_p13 = pneg %p513_p12 }
  0x16   : > { %p520_p4 = por %p519_p3, %p518_p2 }
  0x18   : > { %p521_p5 = pnand %p520_p4, %p514_p13 }
  0x1a   : > { %524 = shalt.err (!%p521_p5)
}
  0x1b   : > { %s525_s20 = scalar_lea.vmem %s680_s5, 512  ;;  %s592_s21 = smov [#allocation2]  }
  0x1c   : > { %p526_p6 = scmp.ne.s32.totalorder %s680_s5, %s525_s20  ;;  %s530_s22 = sshll.u32 %s592_s21, 4  ;;  %s531_s22 = int_to_ptr.vmem [resolvable:$false] %s530_s22 }
  0x1d   : > { %s532_s25 = scalar_lea.vmem %s531_s22, 1024  ;;  %p533_p12 = scmp.lt.s32.totalorder %s680_s5, %s531_s22 }
  0x1e   : > { %p528_p8 = pnand %p526_p6, %p512_p11  ;;  %p534_p0 = scmp.lt.s32.totalorder %s532_s25, %s525_s20 }
  0x20   : > { %p529_p10 = pneg %p528_p8  ;;  %p535_p1 = por %p534_p0, %p533_p12 }
  0x22   : > { %p536_p2 = pnand %p535_p1, %p529_p10 }
  0x24   : > { %539 = shalt.err (!%p536_p2)
}
  0x25   : > { %s593_s26 = smov 128   ;;  %s594_s27 = smov 8  }
  0x26   : > { %456 = dma.hbm_to_vmem [thread:$0]  (!%p676_p9), %s672_s30, 512, %s680_s5, %s682_s7, %s593_s26, %s593_s26, %s594_s27  }
  0x27   : > { %p416_p11 = scmp.ge.s32.totalorder %s590_s17, 1  ;;  %p170_p13 = scmp.lt.s32.totalorder %s590_s17, 3 }
  0x29   : > { %p171_p3 = pnand %p416_p11, %p170_p13 }
  0x2a   : > { %s176_s28 = sand.u32 (!%p171_p3), 1, %s574_s13  }
  0x2b   : > { %174 = sbr.rel (%p171_p3) target bundleno = 278 (0x116), region = 32  ;;  %s417_s29 = sshll.u32 (!%p171_p3), %s176_s28, 5 }
  0x2c   : > { %s177_s4 = scalar_lea.sflag (!%p171_p3), [#allocation3], %s176_s28  ;;  %s180_s8 = scalar_lea.vmem (!%p171_p3), [#allocation2], %s417_s29 }
  0x32   : > { %565 = dma.done.wait (%p659_p7), %s177_s4, 512  }
  0x33   : > { %567 = vsyncadd (%p659_p7), %s177_s4, 4294966784  ;;  %v595_v0 = vmov 0   ;;  %vm232_vm0 = vcmask 261120   ;;  %v216_v1 = vld [vmem:[%s180_s8] sm:$0xff]  ;;  %v217_v2 = vld [vmem:[%s180_s8 + $0x8] sm:$0xff]  ;;  %p206_p7 = scmp.lt.s32.totalorder %s582_s15, 1 }
  0x34   : > { %509 = vset.pattern.permute.xlu0 %v595_v0  ;;  %v218_v3 = vld [vmem:[%s180_s8 + $0x10] sm:$0xff]  ;;  %v443_v4 = vpack.c.bf16 %v217_v2, %v216_v1  ;;  %v219_v5 = vld [vmem:[%s180_s8 + $0x18] sm:$0xff]  ;;  %v214_v6 = vld [vmem:[%s755_s1] sm:$0xff]  ;;  %vm316_vm1 = vcmask 519168   ;;  %vm314_vm2 = vcmask 523264  }
  0x35   : > { %v447_v7 = vpack.c.bf16 %v219_v5, %v218_v3  ;;  %440 = vmatprep.mubr.msk.f32.mxu0 %vm232_vm0, %v214_v6  ;;  %v220_v8 = vld [vmem:[%s756_s2] sm:$0xff]  ;;  %v221_v9 = vld [vmem:[%s756_s2 + $0x8] sm:$0xf]  ;;  %s769_s15 = smov (!%p206_p7, %s582_s15), 1 }
  0x36   : > { %444 = vmatprep.subr.bf16.mxu0 %v443_v4  ;;  %224 = vperm.xlu0 %509, %v220_v8   ;;  %v215_v10 = vld [vmem:[%s755_s1 + $0x8] sm:$0xf]  ;;  %s425_s12 = sshll.u32 %s769_s15, 4 }
  0x37   : > { %446 = vmatpush3.bf16.msra.mxu0 %v443_v4  ;;  %s213_s21 = scalar_lea.vmem %s757_s3, %s425_s12 }
  0x38   : > { %448 = vmatprep.subr.bf16.mxu0 %v447_v7 }
  0x3a   : > { %229 = vperm.xlu0 %509, %v221_v9  }
  0x3b   : > { %450 = vmatpush3.bf16.msra.mxu0 %v447_v7 }
  0x3e   : > { %441 = vmatmul.mubr.msk.f32.vlgmr.msra.gmra.mrb[0].mxu0 %vm232_vm0, %v215_v10 }
  0xb5   : > { %v225_v11 = vpop.permute.xlu0 %224 }
  0xb9   : > { %v230_v12 = vpop.permute.xlu0 %229 }
 0x111   : > { %v442_v13 = vpop.f32.mrb[0].mxu0 }
 0x112   : > { %v311_v14 = vadd.f32 %v442_v13, %v230_v12  ;;  %v305_v15 = vpop.f32.mrb[1].mxu0 }
 0x113   : > { %v306_v16 = vadd.f32 %v305_v15, %v225_v11 }
 0x114   : > { %317 = vst.msk [vmem:[%s213_s21 + $0x8] sm:$0xf] %vm316_vm1, %v311_v14 }
 0x115   : > { %315 = vst.msk [vmem:[%s213_s21] sm:$0xff] %vm314_vm2, %v306_v16 }
 0x116 PF: > { %s16_s17 = sadd.s32 1, %s590_s17   ;;  %s761_s12 = smov %s574_s13 }
 0x117   : > { %p13_p9 = scmp.ge.s32.totalorder %s16_s17, 4   ;;  %s762_s13 = smov %s578_s14 }
 0x118   : > { %s763_s14 = smov %s665_s24  ;;  %s764_s15 = smov %s586_s16 }
 0x119   : > { %s765_s16 = smov %s767_s19  ;;  %15 = sbr.rel (!%p13_p9) target bundleno = 4 (0x4), region = 72 }
 0x120   :  { %345 = vsyncpa [#allocation3], 1 }
 0x121   :  { %347 = vsyncpa [#allocation3 + $0x1], 1 }

</bundles_post_ra>
